<compile_context>
chip_gen: v5e
topology: v5e:2x2
jax: 0.10.0
libtpu: 0.0.40
codegen_flags: <defaults>
</compile_context>

<pallas_src>
import functools

import jax
import jax.numpy as jnp
from jax.experimental import pallas as pl
from jax.experimental.pallas import tpu as pltpu

LOG_STD_MIN = -20.0
LOG_STD_MAX = 2.0
LN_EPS = 1e-5


def _layernorm(h, gamma, beta):
    # Single-pass mean/var: the two reductions are independent; guard against
    # tiny negative variance from E[x^2] - mu^2 cancellation.
    inv_n = 1.0 / h.shape[-1]
    s1 = jnp.sum(h, axis=-1, keepdims=True)
    s2 = jnp.sum(h * h, axis=-1, keepdims=True)
    mu = s1 * inv_n
    var = jnp.maximum(s2 * inv_n - mu * mu, 0.0)
    return (h - mu) * jax.lax.rsqrt(var + LN_EPS) * gamma + beta


def gaussian_policy_kernel(
    state_ref,          # (TILE_B, num_inputs)        io dtype (f32 or bf16)
    w1_ref, p1_ref,     # (num_inputs, H) io dtype, (3, H) f32 rows=[bias,gamma,beta]
    w2_ref, p2_ref,     # (H, H)          io dtype, (3, H) f32
    wh_ref, bh_ref,     # (H, 2A)         io dtype, (1, 2A) f32  fused [mean | log_std]
    mean_ref,           # (TILE_B, A)
    log_std_ref,        # (TILE_B, A)
    *, num_actions,
):
    x = state_ref[...].astype(w1_ref.dtype)

    # fc1 -> ln1 -> relu  (f32 accumulation, LN math in f32)
    p1 = p1_ref[...]
    h = jnp.dot(x, w1_ref[...], preferred_element_type=jnp.float32) + p1[0:1, :]
    h = jnp.maximum(_layernorm(h, p1[1:2, :], p1[2:3, :]), 0.0)

    # fc2 -> ln2 -> relu
    p2 = p2_ref[...]
    h = jnp.dot(h.astype(w2_ref.dtype), w2_ref[...],
                preferred_element_type=jnp.float32) + p2[0:1, :]
    h = jnp.maximum(_layernorm(h, p2[1:2, :], p2[2:3, :]), 0.0)

    # fused heads: single MXU push; split + clamp at the store (no iota/where
    # mask, no wrapper-side slicing passes over HBM).
    y = jnp.dot(h.astype(wh_ref.dtype), wh_ref[...],
                preferred_element_type=jnp.float32) + bh_ref[...]
    mean = y[:, :num_actions]
    log_std = jnp.clip(y[:, num_actions:], LOG_STD_MIN, LOG_STD_MAX)

    mean_ref[...] = mean.astype(mean_ref.dtype)
    log_std_ref[...] = log_std.astype(log_std_ref.dtype)


def _padded_bytes(shape, dtype):
    """Lane/sublane-padded VMEM footprint of one buffer of `shape`."""
    item = jnp.dtype(dtype).itemsize
    shape = tuple(int(d) for d in shape)
    if len(shape) < 2:
        shape = (1,) * (2 - len(shape)) + shape
    lead = 1
    for d in shape[:-2]:
        lead *= d
    rows = -(-shape[-2] // 8) * 8
    cols = -(-shape[-1] // 128) * 128
    return lead * rows * cols * item


def gaussian_policy_forward(state, packed, *, tile_b=4096, vmem_budget_bytes=24 << 20):
    """Forward pass. `packed` is the packed parameter dict from pack_params()."""
    B, num_inputs = state.shape
    two_a = packed["wh"].shape[1]
    num_actions = two_a // 2
    hidden = packed["w1"].shape[1]
    out_dtype = state.dtype

    params = (packed["w1"], packed["p1"], packed["w2"], packed["p2"],
              packed["wh"], packed["bh"])

    # --- batch tile selection --------------------------------------------
    tb = min(int(tile_b), B)
    if B >= 16:
        # guarantee >= 2 grid steps so the "parallel" batch axis can feed both
        # TensorCores on v7x; near-free on single-TC generations.
        half = ((B + 1) // 2 + 7) // 8 * 8
        tb = min(tb, half)
    if tb != B:
        tb = max(8, (tb // 8) * 8)

    def io_footprint(t):
        # double-buffered, padded VMEM footprint of all pipelined blocks
        blocks = _padded_bytes((t, num_inputs), state.dtype)
        blocks += 2 * _padded_bytes((t, num_actions), out_dtype)
        blocks += sum(_padded_bytes(p.shape, p.dtype) for p in params)
        return 2 * blocks

    while tb > 8 and io_footprint(tb) > vmem_budget_bytes:
        tb = max(8, (tb // 2 // 8) * 8)

    grid = (pl.cdiv(B, tb),)

    # scoped-VMEM limit: padded double-buffered blocks + headroom for the
    # lane-padded (tb, H) intermediates Mosaic keeps in VMEM.
    vmem_limit = int(min(max(4 * io_footprint(tb), 32 << 20), 48 << 20))

    kernel = functools.partial(gaussian_policy_kernel, num_actions=num_actions)

    def resident(p):
        # parameter block: fetched once, kept in VMEM across all grid steps
        return pl.BlockSpec(p.shape, lambda i: (0, 0))

    in_bytes = jnp.dtype(state.dtype).itemsize
    out_bytes = jnp.dtype(out_dtype).itemsize
    param_bytes = sum(int(p.size) * jnp.dtype(p.dtype).itemsize for p in params)
    cost = pl.CostEstimate(
        flops=2 * B * (num_inputs * hidden + hidden * hidden + hidden * two_a),
        transcendentals=2 * B,
        bytes_accessed=B * (num_inputs * in_bytes + two_a * out_bytes) + param_bytes,
    )

    mean, log_std = pl.pallas_call(
        kernel,
        out_shape=(
            jax.ShapeDtypeStruct((B, num_actions), out_dtype),
            jax.ShapeDtypeStruct((B, num_actions), out_dtype),
        ),
        grid_spec=pltpu.PrefetchScalarGridSpec(
            num_scalar_prefetch=0,
            grid=grid,
            in_specs=[
                pl.BlockSpec((tb, num_inputs), lambda i: (i, 0)),  # state tile
                resident(packed["w1"]),
                resident(packed["p1"]),
                resident(packed["w2"]),
                resident(packed["p2"]),
                resident(packed["wh"]),
                resident(packed["bh"]),
            ],
            out_specs=(
                pl.BlockSpec((tb, num_actions), lambda i: (i, 0)),  # mean tile
                pl.BlockSpec((tb, num_actions), lambda i: (i, 0)),  # log_std tile
            ),
        ),
        compiler_params=pltpu.CompilerParams(
            dimension_semantics=("parallel",),
            vmem_limit_bytes=vmem_limit,
        ),
        cost_estimate=cost,
    )(state, *params)

    return mean, log_std


def init_params(key, num_inputs, num_actions, hidden_size):
    """Deterministic synthetic parameters (PyTorch Linear W stored transposed)."""
    ks = jax.random.split(key, 4)

    def lin(k, fan_in, fan_out):
        bound = 1.0 / jnp.sqrt(fan_in)
        kw, kb = jax.random.split(k)
        w = jax.random.uniform(kw, (fan_in, fan_out), jnp.float32, -bound, bound)
        b = jax.random.uniform(kb, (1, fan_out), jnp.float32, -bound, bound)
        return w, b

    w1, b1 = lin(ks[0], num_inputs, hidden_size)
    w2, b2 = lin(ks[1], hidden_size, hidden_size)
    wm, bm = lin(ks[2], hidden_size, num_actions)
    ws, bs = lin(ks[3], hidden_size, num_actions)
    return {
        "w1": w1, "b1": b1,
        "g1": jnp.ones((1, hidden_size), jnp.float32),
        "be1": jnp.zeros((1, hidden_size), jnp.float32),
        "w2": w2, "b2": b2,
        "g2": jnp.ones((1, hidden_size), jnp.float32),
        "be2": jnp.zeros((1, hidden_size), jnp.float32),
        "wm": wm, "bm": bm,
        "ws": ws, "bs": bs,
    }


def pack_params(p, weight_dtype=jnp.float32):
    """Pack the 13 PyTorch-style tensors into the 7 refs the kernel expects.

    Matmul weights may be stored bf16 (halves the resident weight footprint and
    uses the bf16 MXU path); bias/gamma/beta stay f32 since LN math is f32.
    """
    return {
        "w1": p["w1"].astype(weight_dtype),
        "p1": jnp.concatenate([p["b1"], p["g1"], p["be1"]], axis=0),   # (3, H) f32
        "w2": p["w2"].astype(weight_dtype),
        "p2": jnp.concatenate([p["b2"], p["g2"], p["be2"]], axis=0),   # (3, H) f32
        "wh": jnp.concatenate([p["wm"], p["ws"]], axis=1).astype(weight_dtype),  # (H, 2A)
        "bh": jnp.concatenate([p["bm"], p["bs"]], axis=1),             # (1, 2A) f32
    }


def reference_forward(state, p):
    def ln(h, g, b):
        mu = jnp.mean(h, axis=-1, keepdims=True)
        var = jnp.mean((h - mu) ** 2, axis=-1, keepdims=True)
        return (h - mu) / jnp.sqrt(var + LN_EPS) * g + b

    h = jax.nn.relu(ln(state @ p["w1"] + p["b1"], p["g1"], p["be1"]))
    h = jax.nn.relu(ln(h @ p["w2"] + p["b2"], p["g2"], p["be2"]))
    mean = h @ p["wm"] + p["bm"]
    log_std = jnp.clip(h @ p["ws"] + p["bs"], LOG_STD_MIN, LOG_STD_MAX)
    return mean, log_std


if __name__ == "__main__":
    # Small shapes consistent with the module: state vectors, not images.
    B, NUM_INPUTS, NUM_ACTIONS, HIDDEN = 8, 16, 8, 32

    key = jax.random.PRNGKey(0)
    k_state, k_params, k_ragged = jax.random.split(key, 3)
    state = jax.random.normal(k_state, (B, NUM_INPUTS), jnp.float32)
    params = init_params(k_params, NUM_INPUTS, NUM_ACTIONS, HIDDEN)
    packed = pack_params(params)

    # f32 path, tight tolerance
    mean, log_std = gaussian_policy_forward(state, packed)
    jax.block_until_ready((mean, log_std))
    ref_mean, ref_log_std = reference_forward(state, params)
    assert jnp.allclose(mean, ref_mean, atol=1e-4, rtol=1e-4)
    assert jnp.allclose(log_std, ref_log_std, atol=1e-4, rtol=1e-4)

    # ragged batch (B not a multiple of the tile -> partial last grid block)
    state_r = jax.random.normal(k_ragged, (20, NUM_INPUTS), jnp.float32)
    mean_r, log_std_r = gaussian_policy_forward(state_r, packed, tile_b=8)
    jax.block_until_ready((mean_r, log_std_r))
    ref_mean_r, ref_log_std_r = reference_forward(state_r, params)
    assert jnp.allclose(mean_r, ref_mean_r, atol=1e-4, rtol=1e-4)
    assert jnp.allclose(log_std_r, ref_log_std_r, atol=1e-4, rtol=1e-4)

    # bf16 batch stream + bf16 resident weights (halves HBM traffic at roofline)
    packed_bf16 = pack_params(params, weight_dtype=jnp.bfloat16)
    mean_b, log_std_b = gaussian_policy_forward(state.astype(jnp.bfloat16), packed_bf16)
    jax.block_until_ready((mean_b, log_std_b))
    assert jnp.allclose(mean_b.astype(jnp.float32), ref_mean, atol=1e-1, rtol=1e-1)
    assert jnp.allclose(log_std_b.astype(jnp.float32), ref_log_std, atol=1e-1, rtol=1e-1)

    # TODO(synk): sample() (Normal.rsample + tanh squash + log_prob) is
    # stochastic glue around this forward pass and is left outside the kernel.
    print("KERNEL_OK")
</pallas_src>

<mosaic_0001>
module attributes {stable_mosaic.version = 11 : i64} {
  func.func @gaussian_policy_kernel(%arg0: i32, %arg1: memref<8x16xf32, #tpu.memory_space<vmem>>, %arg2: memref<16x32xf32, #tpu.memory_space<vmem>>, %arg3: memref<3x32xf32, #tpu.memory_space<vmem>>, %arg4: memref<32x32xf32, #tpu.memory_space<vmem>>, %arg5: memref<3x32xf32, #tpu.memory_space<vmem>>, %arg6: memref<32x16xf32, #tpu.memory_space<vmem>>, %arg7: memref<1x16xf32, #tpu.memory_space<vmem>>, %arg8: memref<8x8xf32, #tpu.memory_space<vmem>>, %arg9: memref<8x8xf32, #tpu.memory_space<vmem>>) attributes {dimension_semantics = [#tpu.dimension_semantics<parallel>], iteration_bounds = array<i64: 1>, scalar_prefetch = 0 : i64, scratch_operands = 0 : i64, tpu.core_type = #tpu.core_type<tc>, window_params = [{transform_indices = @transform_0, window_bounds = array<i64: 8, 16>}, {pipeline_mode = #tpu.pipeline_mode<synchronous>, transform_indices = @transform_1, window_bounds = array<i64: 16, 32>}, {pipeline_mode = #tpu.pipeline_mode<synchronous>, transform_indices = @transform_2, window_bounds = array<i64: 3, 32>}, {pipeline_mode = #tpu.pipeline_mode<synchronous>, transform_indices = @transform_3, window_bounds = array<i64: 32, 32>}, {pipeline_mode = #tpu.pipeline_mode<synchronous>, transform_indices = @transform_4, window_bounds = array<i64: 3, 32>}, {pipeline_mode = #tpu.pipeline_mode<synchronous>, transform_indices = @transform_5, window_bounds = array<i64: 32, 16>}, {pipeline_mode = #tpu.pipeline_mode<synchronous>, transform_indices = @transform_6, window_bounds = array<i64: 1, 16>}, {transform_indices = @transform_7, window_bounds = array<i64: 8, 8>}, {transform_indices = @transform_8, window_bounds = array<i64: 8, 8>}]} {
    %c0 = arith.constant 0 : index
    %c0_0 = arith.constant 0 : index
    %0 = vector.load %arg1[%c0, %c0_0] : memref<8x16xf32, #tpu.memory_space<vmem>>, vector<8x16xf32>
    %c0_1 = arith.constant 0 : index
    %c0_2 = arith.constant 0 : index
    %1 = vector.load %arg3[%c0_1, %c0_2] : memref<3x32xf32, #tpu.memory_space<vmem>>, vector<3x32xf32>
    %c0_3 = arith.constant 0 : index
    %c0_4 = arith.constant 0 : index
    %2 = vector.load %arg2[%c0_3, %c0_4] : memref<16x32xf32, #tpu.memory_space<vmem>>, vector<16x32xf32>
    %cst = arith.constant dense<0.000000e+00> : vector<8x32xf32>
    %3 = tpu.matmul %0, %2, %cst {dimension_numbers = #tpu.dot_dimension_numbers<[1], [0], [0], [1], [0, 0, 1, 1], [], []>} : vector<8x16xf32>, vector<16x32xf32>, vector<8x32xf32> -> vector<8x32xf32>
    %4 = vector.extract_strided_slice %1 {offsets = [0, 0], sizes = [1, 32], strides = [1, 1]} : vector<3x32xf32> to vector<1x32xf32>
    %5 = vector.broadcast %4 : vector<1x32xf32> to vector<8x32xf32>
    %6 = arith.addf %3, %5 : vector<8x32xf32>
    %7 = vector.extract_strided_slice %1 {offsets = [1, 0], sizes = [1, 32], strides = [1, 1]} : vector<3x32xf32> to vector<1x32xf32>
    %8 = vector.extract_strided_slice %1 {offsets = [2, 0], sizes = [1, 32], strides = [1, 1]} : vector<3x32xf32> to vector<1x32xf32>
    %cst_5 = arith.constant dense<0.000000e+00> : vector<8xf32>
    %9 = vector.multi_reduction <add>, %6, %cst_5 [1] : vector<8x32xf32> to vector<8xf32>
    %10 = vector.shape_cast %9 : vector<8xf32> to vector<8x1xf32>
    %11 = arith.mulf %6, %6 : vector<8x32xf32>
    %cst_6 = arith.constant dense<0.000000e+00> : vector<8xf32>
    %12 = vector.multi_reduction <add>, %11, %cst_6 [1] : vector<8x32xf32> to vector<8xf32>
    %13 = vector.shape_cast %12 : vector<8xf32> to vector<8x1xf32>
    %cst_7 = arith.constant 3.125000e-02 : f32
    %14 = vector.broadcast %cst_7 : f32 to vector<8x1xf32>
    %15 = arith.mulf %10, %14 : vector<8x1xf32>
    %cst_8 = arith.constant 3.125000e-02 : f32
    %16 = vector.broadcast %cst_8 : f32 to vector<8x1xf32>
    %17 = arith.mulf %13, %16 : vector<8x1xf32>
    %18 = arith.mulf %15, %15 : vector<8x1xf32>
    %19 = arith.subf %17, %18 : vector<8x1xf32>
    %cst_9 = arith.constant 0.000000e+00 : f32
    %20 = vector.broadcast %cst_9 : f32 to vector<8x1xf32>
    %21 = arith.maximumf %19, %20 : vector<8x1xf32>
    %22 = vector.broadcast %15 : vector<8x1xf32> to vector<8x32xf32>
    %23 = arith.subf %6, %22 : vector<8x32xf32>
    %cst_10 = arith.constant 9.99999974E-6 : f32
    %24 = vector.broadcast %cst_10 : f32 to vector<8x1xf32>
    %25 = arith.addf %21, %24 : vector<8x1xf32>
    %26 = math.rsqrt %25 : vector<8x1xf32>
    %27 = vector.broadcast %26 : vector<8x1xf32> to vector<8x32xf32>
    %28 = arith.mulf %23, %27 : vector<8x32xf32>
    %29 = vector.broadcast %7 : vector<1x32xf32> to vector<8x32xf32>
    %30 = arith.mulf %28, %29 : vector<8x32xf32>
    %31 = vector.broadcast %8 : vector<1x32xf32> to vector<8x32xf32>
    %32 = arith.addf %30, %31 : vector<8x32xf32>
    %cst_11 = arith.constant 0.000000e+00 : f32
    %33 = vector.broadcast %cst_11 : f32 to vector<8x32xf32>
    %34 = arith.maximumf %32, %33 : vector<8x32xf32>
    %c0_12 = arith.constant 0 : index
    %c0_13 = arith.constant 0 : index
    %35 = vector.load %arg5[%c0_12, %c0_13] : memref<3x32xf32, #tpu.memory_space<vmem>>, vector<3x32xf32>
    %c0_14 = arith.constant 0 : index
    %c0_15 = arith.constant 0 : index
    %36 = vector.load %arg4[%c0_14, %c0_15] : memref<32x32xf32, #tpu.memory_space<vmem>>, vector<32x32xf32>
    %cst_16 = arith.constant dense<0.000000e+00> : vector<8x32xf32>
    %37 = tpu.matmul %34, %36, %cst_16 {dimension_numbers = #tpu.dot_dimension_numbers<[1], [0], [0], [1], [0, 0, 1, 1], [], []>} : vector<8x32xf32>, vector<32x32xf32>, vector<8x32xf32> -> vector<8x32xf32>
    %38 = vector.extract_strided_slice %35 {offsets = [0, 0], sizes = [1, 32], strides = [1, 1]} : vector<3x32xf32> to vector<1x32xf32>
    %39 = vector.broadcast %38 : vector<1x32xf32> to vector<8x32xf32>
    %40 = arith.addf %37, %39 : vector<8x32xf32>
    %41 = vector.extract_strided_slice %35 {offsets = [1, 0], sizes = [1, 32], strides = [1, 1]} : vector<3x32xf32> to vector<1x32xf32>
    %42 = vector.extract_strided_slice %35 {offsets = [2, 0], sizes = [1, 32], strides = [1, 1]} : vector<3x32xf32> to vector<1x32xf32>
    %cst_17 = arith.constant dense<0.000000e+00> : vector<8xf32>
    %43 = vector.multi_reduction <add>, %40, %cst_17 [1] : vector<8x32xf32> to vector<8xf32>
    %44 = vector.shape_cast %43 : vector<8xf32> to vector<8x1xf32>
    %45 = arith.mulf %40, %40 : vector<8x32xf32>
    %cst_18 = arith.constant dense<0.000000e+00> : vector<8xf32>
    %46 = vector.multi_reduction <add>, %45, %cst_18 [1] : vector<8x32xf32> to vector<8xf32>
    %47 = vector.shape_cast %46 : vector<8xf32> to vector<8x1xf32>
    %cst_19 = arith.constant 3.125000e-02 : f32
    %48 = vector.broadcast %cst_19 : f32 to vector<8x1xf32>
    %49 = arith.mulf %44, %48 : vector<8x1xf32>
    %cst_20 = arith.constant 3.125000e-02 : f32
    %50 = vector.broadcast %cst_20 : f32 to vector<8x1xf32>
    %51 = arith.mulf %47, %50 : vector<8x1xf32>
    %52 = arith.mulf %49, %49 : vector<8x1xf32>
    %53 = arith.subf %51, %52 : vector<8x1xf32>
    %cst_21 = arith.constant 0.000000e+00 : f32
    %54 = vector.broadcast %cst_21 : f32 to vector<8x1xf32>
    %55 = arith.maximumf %53, %54 : vector<8x1xf32>
    %56 = vector.broadcast %49 : vector<8x1xf32> to vector<8x32xf32>
    %57 = arith.subf %40, %56 : vector<8x32xf32>
    %cst_22 = arith.constant 9.99999974E-6 : f32
    %58 = vector.broadcast %cst_22 : f32 to vector<8x1xf32>
    %59 = arith.addf %55, %58 : vector<8x1xf32>
    %60 = math.rsqrt %59 : vector<8x1xf32>
    %61 = vector.broadcast %60 : vector<8x1xf32> to vector<8x32xf32>
    %62 = arith.mulf %57, %61 : vector<8x32xf32>
    %63 = vector.broadcast %41 : vector<1x32xf32> to vector<8x32xf32>
    %64 = arith.mulf %62, %63 : vector<8x32xf32>
    %65 = vector.broadcast %42 : vector<1x32xf32> to vector<8x32xf32>
    %66 = arith.addf %64, %65 : vector<8x32xf32>
    %cst_23 = arith.constant 0.000000e+00 : f32
    %67 = vector.broadcast %cst_23 : f32 to vector<8x32xf32>
    %68 = arith.maximumf %66, %67 : vector<8x32xf32>
    %c0_24 = arith.constant 0 : index
    %c0_25 = arith.constant 0 : index
    %69 = vector.load %arg6[%c0_24, %c0_25] : memref<32x16xf32, #tpu.memory_space<vmem>>, vector<32x16xf32>
    %cst_26 = arith.constant dense<0.000000e+00> : vector<8x16xf32>
    %70 = tpu.matmul %68, %69, %cst_26 {dimension_numbers = #tpu.dot_dimension_numbers<[1], [0], [0], [1], [0, 0, 1, 1], [], []>} : vector<8x32xf32>, vector<32x16xf32>, vector<8x16xf32> -> vector<8x16xf32>
    %c0_27 = arith.constant 0 : index
    %c0_28 = arith.constant 0 : index
    %71 = vector.load %arg7[%c0_27, %c0_28] : memref<1x16xf32, #tpu.memory_space<vmem>>, vector<1x16xf32>
    %72 = vector.broadcast %71 : vector<1x16xf32> to vector<8x16xf32>
    %73 = arith.addf %70, %72 : vector<8x16xf32>
    %74 = vector.extract_strided_slice %73 {offsets = [0, 0], sizes = [8, 8], strides = [1, 1]} : vector<8x16xf32> to vector<8x8xf32>
    %75 = vector.extract_strided_slice %73 {offsets = [0, 8], sizes = [8, 8], strides = [1, 1]} : vector<8x16xf32> to vector<8x8xf32>
    %cst_29 = arith.constant -2.000000e+01 : f32
    %cst_30 = arith.constant 2.000000e+00 : f32
    %76 = vector.broadcast %cst_29 : f32 to vector<8x8xf32>
    %77 = arith.maximumf %76, %75 : vector<8x8xf32>
    %78 = vector.broadcast %cst_30 : f32 to vector<8x8xf32>
    %79 = arith.minimumf %78, %77 : vector<8x8xf32>
    %c0_31 = arith.constant 0 : index
    %c0_32 = arith.constant 0 : index
    %80 = vector.load %arg8[%c0_31, %c0_32] : memref<8x8xf32, #tpu.memory_space<vmem>>, vector<8x8xf32>
    tpu.vector_store %arg8[%c0_31, %c0_32], %74 {strides = array<i32>} : memref<8x8xf32, #tpu.memory_space<vmem>>, vector<8x8xf32>,
    %c0_33 = arith.constant 0 : index
    %c0_34 = arith.constant 0 : index
    %81 = vector.load %arg9[%c0_33, %c0_34] : memref<8x8xf32, #tpu.memory_space<vmem>>, vector<8x8xf32>
    tpu.vector_store %arg9[%c0_33, %c0_34], %79 {strides = array<i32>} : memref<8x8xf32, #tpu.memory_space<vmem>>, vector<8x8xf32>,
    return
  }
  func.func @transform_0(%arg0: i32) -> (i32, i32) {
    %c0_i32 = arith.constant 0 : i32
    %c0_i32_0 = arith.constant 0 : i32
    return %arg0, %c0_i32 : i32, i32
  }
  func.func @transform_1(%arg0: i32) -> (i32, i32) {
    %c0_i32 = arith.constant 0 : i32
    %c0_i32_0 = arith.constant 0 : i32
    %c0_i32_1 = arith.constant 0 : i32
    return %c0_i32, %c0_i32_0 : i32, i32
  }
  func.func @transform_2(%arg0: i32) -> (i32, i32) {
    %c0_i32 = arith.constant 0 : i32
    %c0_i32_0 = arith.constant 0 : i32
    %c0_i32_1 = arith.constant 0 : i32
    return %c0_i32, %c0_i32_0 : i32, i32
  }
  func.func @transform_3(%arg0: i32) -> (i32, i32) {
    %c0_i32 = arith.constant 0 : i32
    %c0_i32_0 = arith.constant 0 : i32
    %c0_i32_1 = arith.constant 0 : i32
    return %c0_i32, %c0_i32_0 : i32, i32
  }
  func.func @transform_4(%arg0: i32) -> (i32, i32) {
    %c0_i32 = arith.constant 0 : i32
    %c0_i32_0 = arith.constant 0 : i32
    %c0_i32_1 = arith.constant 0 : i32
    return %c0_i32, %c0_i32_0 : i32, i32
  }
  func.func @transform_5(%arg0: i32) -> (i32, i32) {
    %c0_i32 = arith.constant 0 : i32
    %c0_i32_0 = arith.constant 0 : i32
    %c0_i32_1 = arith.constant 0 : i32
    return %c0_i32, %c0_i32_0 : i32, i32
  }
  func.func @transform_6(%arg0: i32) -> (i32, i32) {
    %c0_i32 = arith.constant 0 : i32
    %c0_i32_0 = arith.constant 0 : i32
    %c0_i32_1 = arith.constant 0 : i32
    return %c0_i32, %c0_i32_0 : i32, i32
  }
  func.func @transform_7(%arg0: i32) -> (i32, i32) {
    %c0_i32 = arith.constant 0 : i32
    %c0_i32_0 = arith.constant 0 : i32
    return %arg0, %c0_i32 : i32, i32
  }
  func.func @transform_8(%arg0: i32) -> (i32, i32) {
    %c0_i32 = arith.constant 0 : i32
    %c0_i32_0 = arith.constant 0 : i32
    return %arg0, %c0_i32 : i32, i32
  }
}

</mosaic_0001>

<bundles_post_ra>
// kernel: tpu_custom_call.1
= control target key start
LH: loop header
LB: loop body
LE: loop exit
PB: predicated region body
PF: predicated region fallthrough
CT: control target
= control target key end

     0   :  { %14 = vsyncpa [#allocation3], 0  ;;  %s513_s0 = inlined_call_operand.hbm [shape: f32[8,16], index: 0, kind: input, shape index: {}]   ;;  %s514_s1 = inlined_call_operand.vmem [shape: f32[16,32], index: 1, kind: input, shape index: {}]   ;;  %s515_s2 = inlined_call_operand.hbm [shape: f32[3,32], index: 2, kind: input, shape index: {}]   ;;  %s516_s3 = inlined_call_operand.vmem [shape: f32[32,32], index: 3, kind: input, shape index: {}]   ;;  %s517_s4 = inlined_call_operand.hbm [shape: f32[3,32], index: 4, kind: input, shape index: {}]   ;;  %s518_s5 = inlined_call_operand.vmem [shape: f32[32,16], index: 5, kind: input, shape index: {}]   ;;  %s519_s6 = inlined_call_operand.vmem [shape: f32[1,16], index: 6, kind: input, shape index: {}]   ;;  %s520_s7 = inlined_call_operand.hbm [shape: f32[8,8], index: 7, kind: output, shape index: {0}]   ;;  %s521_s8 = inlined_call_operand.hbm [shape: f32[8,8], index: 8, kind: output, shape index: {1}]  }
   0x1   :  { %15 = vsyncpa [#allocation6], 0 }
   0x2   :  { %16 = vsyncpa [#allocation4], 0  ;;  %s36_s29 = sshll.u32 %s515_s2, 4  ;;  %s37_s29 = int_to_ptr.hbm [resolvable:$true] %s36_s29 }
   0x3   :  { %17 = vsyncpa [#allocation10], 0  ;;  %s406_s30 = smov [#allocation5]   ;;  %s23_s12 = sshll.u32 %s513_s0, 4  ;;  %s24_s12 = int_to_ptr.hbm [resolvable:$true] %s23_s12 }
   0x4   :  { %s38_s9 = sshll.u32 %s406_s30, 4  ;;  %s407_s13 = smov [#allocation2]   ;;  %s39_s9 = int_to_ptr.vmem [resolvable:$true] %s38_s9 }
   0x5   :  { %41 = dma.hbm_to_vmem [thread:$0]  %s37_s29, 64, %s39_s9, [#allocation6]  }
   0x6   :  { %s25_s14 = sshll.u32 %s407_s13, 4  ;;  %s49_s17 = sshll.u32 %s517_s4, 4  ;;  %s26_s14 = int_to_ptr.vmem [resolvable:$true] %s25_s14  ;;  %s50_s17 = int_to_ptr.hbm [resolvable:$true] %s49_s17 }
   0x7   :  { %28 = dma.hbm_to_vmem [thread:$0]  %s24_s12, 128, %s26_s14, [#allocation3]  }
   0x8   :  { %s408_s2 = smov [#allocation7]  }
   0x9   :  { %s51_s18 = sshll.u32 %s408_s2, 4  ;;  %s52_s18 = int_to_ptr.vmem [resolvable:$true] %s51_s18 }
   0xa   :  { %54 = dma.hbm_to_vmem [thread:$0]  %s50_s17, 64, %s52_s18, [#allocation6]  }
   0xb   :  { %398 = dma.done.wait [#allocation3], 128  }
   0xc   :  { %399 = vsyncadd [#allocation3], 4294967168 }
   0xd   :  { %400 = dma.done.wait [#allocation6], 128  }
   0xe   :  { %401 = vsyncadd [#allocation6], 4294967168  ;;  %v74_v0 = vld [vmem:[%s514_s1 + $0x8] sm:$0xff]  ;;  %v73_v1 = vld [vmem:[%s514_s1] sm:$0xff]  ;;  %vm76_vm0 = vcmask 130048   ;;  %vm100_vm1 = vcmask 261120  }
   0xf   :  { %94 = vmatpush.msra.mxu0 %v74_v0  ;;  %v71_v2 = vld [vmem:[#allocation2] sm:$0xff]  ;;  %v72_v3 = vld [vmem:[#allocation5] sm:$0x7]  ;;  %v135_v11 = vld [vmem:[%s516_s3 + $0x18] sm:$0xff]  ;;  %s409_s14 = smov [#allocation8]   ;;  %s237_s2 = sshll.u32 %s520_s7, 4  ;;  %s238_s2 = int_to_ptr.hbm [resolvable:$true] %s237_s2 }
  0x10   :  { %v75_v4 = vperm.slane %v72_v3, 0  ;;  %v134_v12 = vld [vmem:[%s516_s3 + $0x10] sm:$0xff]  ;;  %152 = vmatpush.msra.mxu1 %v135_v11  ;;  %v133_v13 = vld [vmem:[%s516_s3 + $0x8] sm:$0xff]  ;;  %v132_v14 = vld [vmem:[%s516_s3] sm:$0xff]  ;;  %v126_v28 = vperm.slane %v72_v3, 1  ;;  %v128_v32 = vperm.slane %v72_v3, 2 }
  0x11   :  { %95 = vmatpush.msra.mxu0 %v73_v1  ;;  %v131_v36 = vld [vmem:[#allocation7] sm:$0x7]  ;;  %v193_v44 = vld [vmem:[%s518_s5 + $0x18] sm:$0xff]  ;;  %v192_v45 = vld [vmem:[%s518_s5 + $0x10] sm:$0xff]  ;;  %s235_s15 = sshll.u32 %s409_s14, 4  ;;  %vm223_vm8 = vcmask 64512   ;;  %s236_s15 = int_to_ptr.vmem [resolvable:$true] %s235_s15 }
  0x12   :  { %264 = vmatmul.msk.f32.vlgmr.msra.gmra.mxu0 %vm76_vm0, %v71_v2  ;;  %153 = vmatpush.msra.mxu1 %v134_v12  ;;  %v136_v37 = vperm.slane %v131_v36, 0  ;;  %v191_v46 = vld [vmem:[%s518_s5 + $0x8] sm:$0xff]  ;;  %v190_v47 = vld [vmem:[%s518_s5] sm:$0xff]  ;;  %v185_v61 = vperm.slane %v131_v36, 1  ;;  %v187_v1 = vperm.slane %v131_v36, 2  ;;  %s410_s18 = smov 120  }
  0x13   :  { %213 = vmatpush.msra.mxu2 %v193_v44  ;;  %s411_s0 = smov [#allocation9]   ;;  %s248_s21 = sshll.u32 %s521_s8, 4  ;;  %s249_s21 = int_to_ptr.hbm [resolvable:$true] %s248_s21 }
  0x14   :  { %154 = vmatpush.msra.mxu1 %v133_v13 }
  0x15   :  { %214 = vmatpush.msra.mxu2 %v192_v45 }
  0x16   :  { %155 = vmatpush.msra.mxu1 %v132_v14 }
  0x17   :  { %215 = vmatpush.msra.mxu2 %v191_v46 }
  0x19   :  { %216 = vmatpush.msra.mxu2 %v190_v47 }
  0x8f   :  { %v97_v5 = vpop.f32.mrf.mxu0 }
  0x90   :  { %v98_v6 = vadd.f32 %v97_v5, %v75_v4  ;;  %v273_v5 = vld [vmem:[%s519_s6] ss:$0 sm:$0xff]  ;;  %s246_s6 = sshll.u32 %s411_s0, 4  ;;  %s247_s6 = int_to_ptr.vmem [resolvable:$true] %s246_s6 }
  0x92   :  { %v101_v7 = vsel %vm100_vm1, %v98_v6, 0.0  ;;  %v104_v8 = vmul.f32 %v98_v6, %v98_v6 }
  0x93   :  { %102 = vadd.xlane.f32.xlu0 %v101_v7 }
  0x94   :  { %v105_v9 = vsel %vm100_vm1, %v104_v8, 0.0 }
  0x9b   :  { %106 = vadd.xlane.f32.xlu0 %v105_v9 }
 0x106   :  { %v103_v10 = vpop.xlane.xlu0 %102 }
 0x107   :  { %v108_v15 = vmul.f32 0.03125, %v103_v10 }
 0x109   :  { %v110_v17 = vmul.f32 %v108_v15, %v108_v15  ;;  %v113_v29 = vsub.f32 %v98_v6, %v108_v15 }
 0x10e   :  { %v107_v16 = vpop.xlane.xlu0 %106 }
 0x10f   :  { %v109_v18 = vmul.f32 0.03125, %v107_v16 }
 0x111   :  { %v111_v19 = vsub.f32 %v109_v18, %v110_v17 }
 0x113   :  { %v112_v20 = vmax.f32 %v111_v19, 0.0 }
 0x115   :  { %v114_v21 = vadd.f32 1e-05, %v112_v20 }
 0x117   :  { %274 = vrsqrt.f32 %v114_v21  ;;  %vm121_vm3 = vweird.f32 %v114_v21 }
 0x11d   :  { %v275_v22 = vpop.eup %274 }
 0x11e   :  { %v116_v23 = vmul.f32 %v275_v22, %v114_v21  ;;  %vm122_vm2 = vweird.f32 %v275_v22 }
 0x11f   :  { %vm123_vm4 = vmor %vm121_vm3, %vm122_vm2 }
 0x120   :  { %v117_v24 = vmul.f32 %v275_v22, %v116_v23 }
 0x122   :  { %v118_v25 = vmul.f32 0.5, %v117_v24 }
 0x124   :  { %v119_v26 = vsub.f32 1.5, %v118_v25 }
 0x126   :  { %v120_v27 = vmul.f32 %v275_v22, %v119_v26 }
 0x128   :  { %v124_v30 = vsel %vm123_vm4, %v275_v22, %v120_v27 }
 0x129   :  { %v125_v31 = vmul.f32 %v124_v30, %v113_v29 }
 0x12b   :  { %v127_v33 = vmul.f32 %v126_v28, %v125_v31 }
 0x12d   :  { %v129_v34 = vadd.f32 %v128_v32, %v127_v33 }
 0x12f   :  { %v130_v35 = vmax.f32 %v129_v34, 0.0 }
 0x131   :  { %265 = vmatmul.msk.f32.vlgmr.msra.gmra.mxu1 %vm100_vm1, %v130_v35 }
 0x1ae   :  { %v157_v38 = vpop.f32.mrf.mxu1 }
 0x1af   :  { %v158_v39 = vadd.f32 %v157_v38, %v136_v37 }
 0x1b1   :  { %v160_v40 = vsel %vm100_vm1, %v158_v39, 0.0  ;;  %v163_v41 = vmul.f32 %v158_v39, %v158_v39 }
 0x1b2   :  { %161 = vadd.xlane.f32.xlu1 %v160_v40 }
 0x1b3   :  { %v164_v42 = vsel %vm100_vm1, %v163_v41, 0.0 }
 0x1ba   :  { %165 = vadd.xlane.f32.xlu1 %v164_v42 }
 0x225   :  { %v162_v43 = vpop.xlane.xlu1 %161 }
 0x226   :  { %v167_v48 = vmul.f32 0.03125, %v162_v43 }
 0x228   :  { %v169_v50 = vmul.f32 %v167_v48, %v167_v48  ;;  %v172_v62 = vsub.f32 %v158_v39, %v167_v48 }
 0x22d   :  { %v166_v49 = vpop.xlane.xlu1 %165 }
 0x22e   :  { %v168_v51 = vmul.f32 0.03125, %v166_v49 }
 0x230   :  { %v170_v52 = vsub.f32 %v168_v51, %v169_v50 }
 0x232   :  { %v171_v53 = vmax.f32 %v170_v52, 0.0 }
 0x234   :  { %v173_v54 = vadd.f32 1e-05, %v171_v53 }
 0x236   :  { %276 = vrsqrt.f32 %v173_v54  ;;  %vm180_vm6 = vweird.f32 %v173_v54 }
 0x23c   :  { %v277_v55 = vpop.eup %276 }
 0x23d   :  { %v175_v56 = vmul.f32 %v277_v55, %v173_v54  ;;  %vm181_vm5 = vweird.f32 %v277_v55 }
 0x23e   :  { %vm182_vm7 = vmor %vm180_vm6, %vm181_vm5 }
 0x23f   :  { %v176_v57 = vmul.f32 %v277_v55, %v175_v56 }
 0x241   :  { %v177_v58 = vmul.f32 0.5, %v176_v57 }
 0x243   :  { %v178_v59 = vsub.f32 1.5, %v177_v58 }
 0x245   :  { %v179_v60 = vmul.f32 %v277_v55, %v178_v59 }
 0x247   :  { %v183_v63 = vsel %vm182_vm7, %v277_v55, %v179_v60 }
 0x248   :  { %v184_v0 = vmul.f32 %v183_v63, %v172_v62 }
 0x24a   :  { %v186_v2 = vmul.f32 %v185_v61, %v184_v0 }
 0x24c   :  { %v188_v3 = vadd.f32 %v187_v1, %v186_v2 }
 0x24e   :  { %v189_v4 = vmax.f32 %v188_v3, 0.0 }
 0x250   :  { %266 = vmatmul.msk.f32.vlgmr.msra.gmra.mxu2 %vm100_vm1, %v189_v4 }
 0x2d3   :  { %v218_v6 = vpop.f32.mrf.mxu2 }
 0x2d4   :  { %v219_v7 = vadd.f32 %v273_v5, %v218_v6 }
 0x2d6   :  { %v221_v8 = vmax.f32 %v219_v7, -20.0  ;;  %224 = vst.msk [vmem:[#allocation8] sm:$0xff] %vm223_vm8, %v219_v7 }
 0x2d7   :  { %240 = dma.vmem_to_hbm [thread:$0]  %s236_s15, 128, %s238_s2, [#allocation4]  }
 0x2d8   :  { %v222_v9 = vmin.f32 %v221_v8, 2.0 }
 0x2da   :  { %226 = vrot.lane.b32.xlu2 %v222_v9, %s410_s18 }
 0x334   :  { %v227_v10 = vpop.permute.xlu2 %226 }
 0x335   :  { %229 = vst.msk [vmem:[#allocation9] sm:$0xff] %vm223_vm8, %v227_v10 }
 0x336   :  { %251 = dma.vmem_to_hbm [thread:$0]  %s247_s6, 128, %s249_s21, [#allocation10]  }
 0x337   :  { %402 = dma.done.wait [#allocation4], 128  }
 0x338   :  { %403 = vsyncadd [#allocation4], 4294967168 }
 0x339   :  { %404 = dma.done.wait [#allocation10], 128  }
 0x33a   :  { %405 = vsyncadd [#allocation10], 4294967168 }
 0x33b   :  { %260 = vsyncpa [#allocation3], 1 }
 0x33c   :  { %261 = vsyncpa [#allocation6], 1 }
 0x33d   :  { %262 = vsyncpa [#allocation4], 1 }
 0x33e   :  { %263 = vsyncpa [#allocation10], 1 }

</bundles_post_ra>
